<compile_context>
chip_gen: v6e
topology: v6e:2x2x1
jax: 0.10.0
libtpu: 0.0.40
codegen_flags: <defaults>
</compile_context>

<pallas_src>
import jax
import jax.numpy as jnp
from jax.experimental import pallas as pl
from jax.experimental.pallas import tpu as pltpu

NUM_STATES = 16
NUM_ACTIONS = 4
HIDDEN = 128
BATCH = 8

IN_PACK = NUM_STATES + 1          # ones column appended to states
HID_PACK = 3 * HIDDEN + 128       # 3 hidden blocks + 128-lane pad (col 384 == 1)
OUT_PACK = 3 * NUM_ACTIONS        # logits | q1 | q2


def sac_kernel(alpha_ref, x_ref, w1_ref, w2_ref, out_ref):
    x = x_ref[...]                                     # [B, 17] (last col == 1)

    # Fused layer 1: all three nets' first layers + biases in one MXU matmul.
    h = jnp.maximum(
        jnp.dot(x, w1_ref[...], preferred_element_type=jnp.float32), 0.0)
    # h[:, 384] == relu(1) == 1  -> carries the second-layer biases.

    # Fused layer 2: block-diagonal weights + bias row, one MXU matmul.
    y = jnp.dot(h, w2_ref[...], preferred_element_type=jnp.float32)   # [B, 12]

    logits = y[:, 0:NUM_ACTIONS]
    q1 = y[:, NUM_ACTIONS:2 * NUM_ACTIONS]
    q2 = y[:, 2 * NUM_ACTIONS:3 * NUM_ACTIONS]

    # ---- softmax (policy) ----
    m = jnp.max(logits, axis=-1, keepdims=True)
    e = jnp.exp(logits - m)
    denom = jnp.sum(e, axis=-1, keepdims=True)
    probs = e * pl.reciprocal(denom, approx=False)     # exact: keep 1e-5 tol
    logp = jnp.log(probs + 1e-8)                       # matches torch semantics

    # ---- soft state value ----
    qmin = jnp.minimum(q1, q2)
    alpha = alpha_ref[0]
    sval = jnp.sum(probs * (qmin - alpha * logp), axis=-1, keepdims=True)

    # Single lane-dense output slab: [probs | logp | sval | zero pad].
    out_ref[...] = jnp.zeros_like(out_ref)
    out_ref[:, 0:NUM_ACTIONS] = probs
    out_ref[:, NUM_ACTIONS:2 * NUM_ACTIONS] = logp
    out_ref[:, 2 * NUM_ACTIONS:2 * NUM_ACTIONS + 1] = sval


@jax.jit
def sac_forward(alpha, states, w1_packed, w2_packed):
    B = states.shape[0]
    x_aug = jnp.concatenate(
        [states, jnp.ones((B, 1), states.dtype)], axis=-1)        # [B, 17]

    vmem = pl.BlockSpec(memory_space=pltpu.MemorySpace.VMEM)
    smem = pl.BlockSpec(memory_space=pltpu.MemorySpace.SMEM)

    packed = pl.pallas_call(
        sac_kernel,
        out_shape=jax.ShapeDtypeStruct((B, 128), jnp.float32),
        in_specs=[smem, vmem, vmem, vmem],
        out_specs=vmem,
    )(alpha, x_aug, w1_packed, w2_packed)

    probs = packed[:, 0:NUM_ACTIONS]
    logp = packed[:, NUM_ACTIONS:2 * NUM_ACTIONS]
    sval = packed[:, 2 * NUM_ACTIONS:2 * NUM_ACTIONS + 1]

    # Greedy action (argmax of log-probs) — cheap glue, fused by jit.
    # TODO(synk): Categorical.sample() (stochastic action draw) is RNG-dependent
    # and not reproduced here; greedy_policy's argmax is.
    greedy_action = jnp.argmax(logp, axis=-1, keepdims=True)
    return probs, logp, sval, greedy_action


# ----------------------- parameter construction / packing -----------------------

def _kaiming_uniform(key, in_size, out_size):
    bound = jnp.sqrt(6.0 / in_size)
    # stored as [in, out] (transposed vs PyTorch's [out, in]) for x @ W
    return jax.random.uniform(key, (in_size, out_size), jnp.float32,
                              -bound, bound)


def make_net_params(key, in_size, hidden, out_size):
    k1, k2 = jax.random.split(key)
    w1 = _kaiming_uniform(k1, in_size, hidden)
    b1 = jnp.zeros((1, hidden), jnp.float32)
    w2 = _kaiming_uniform(k2, hidden, out_size)
    b2 = jnp.zeros((1, out_size), jnp.float32)
    return (w1, b1, w2, b2)


def pack_params(policy_params, tgt1_params, tgt2_params):
    """Pack 12 small tensors into two lane-dense slabs (biases folded in)."""
    pw1, pb1, pw2, pb2 = policy_params
    t1w1, t1b1, t1w2, t1b2 = tgt1_params
    t2w1, t2b1, t2w2, t2b2 = tgt2_params

    w1p = jnp.zeros((IN_PACK, HID_PACK), jnp.float32)
    w1p = w1p.at[:NUM_STATES, 0:HIDDEN].set(pw1)
    w1p = w1p.at[:NUM_STATES, HIDDEN:2 * HIDDEN].set(t1w1)
    w1p = w1p.at[:NUM_STATES, 2 * HIDDEN:3 * HIDDEN].set(t2w1)
    w1p = w1p.at[NUM_STATES, 0:HIDDEN].set(pb1[0])
    w1p = w1p.at[NUM_STATES, HIDDEN:2 * HIDDEN].set(t1b1[0])
    w1p = w1p.at[NUM_STATES, 2 * HIDDEN:3 * HIDDEN].set(t2b1[0])
    w1p = w1p.at[NUM_STATES, 3 * HIDDEN].set(1.0)   # constant-1 hidden unit

    w2p = jnp.zeros((HID_PACK, OUT_PACK), jnp.float32)
    w2p = w2p.at[0:HIDDEN, 0:NUM_ACTIONS].set(pw2)
    w2p = w2p.at[HIDDEN:2 * HIDDEN, NUM_ACTIONS:2 * NUM_ACTIONS].set(t1w2)
    w2p = w2p.at[2 * HIDDEN:3 * HIDDEN, 2 * NUM_ACTIONS:3 * NUM_ACTIONS].set(t2w2)
    w2p = w2p.at[3 * HIDDEN, 0:NUM_ACTIONS].set(pb2[0])
    w2p = w2p.at[3 * HIDDEN, NUM_ACTIONS:2 * NUM_ACTIONS].set(t1b2[0])
    w2p = w2p.at[3 * HIDDEN, 2 * NUM_ACTIONS:3 * NUM_ACTIONS].set(t2b2[0])
    return w1p, w2p


def reference_forward(alpha, states, policy_params, tgt1_params, tgt2_params):
    def mlp(x, p):
        w1, b1, w2, b2 = p
        return jnp.maximum(x @ w1 + b1, 0.0) @ w2 + b2

    logits = mlp(states, policy_params)
    probs = jax.nn.softmax(logits, axis=-1)
    logp = jnp.log(probs + 1e-8)
    qmin = jnp.minimum(mlp(states, tgt1_params), mlp(states, tgt2_params))
    sval = jnp.sum(probs * (qmin - alpha[0] * logp), axis=-1, keepdims=True)
    return probs, logp, sval


if __name__ == "__main__":
    key = jax.random.PRNGKey(0)
    k_s, k_p, k_t1, k_t2 = jax.random.split(key, 4)

    states = jax.random.normal(k_s, (BATCH, NUM_STATES), jnp.float32)
    policy_params = make_net_params(k_p, NUM_STATES, HIDDEN, NUM_ACTIONS)
    tgt1_params = make_net_params(k_t1, NUM_STATES, HIDDEN, NUM_ACTIONS)
    tgt2_params = make_net_params(k_t2, NUM_STATES, HIDDEN, NUM_ACTIONS)
    alpha = jnp.array([0.2], jnp.float32)  # ALPHA * ones(1)

    w1_packed, w2_packed = pack_params(policy_params, tgt1_params, tgt2_params)
    w1_packed, w2_packed = jax.block_until_ready((w1_packed, w2_packed))

    probs, logp, sval, greedy = sac_forward(alpha, states, w1_packed, w2_packed)
    jax.block_until_ready((probs, logp, sval, greedy))

    # correctness check vs pure-JAX reference (unpacked params)
    r_probs, r_logp, r_sval = reference_forward(
        alpha, states, policy_params, tgt1_params, tgt2_params)
    assert jnp.allclose(probs, r_probs, atol=1e-5, rtol=1e-5)
    assert jnp.allclose(logp, r_logp, atol=1e-5, rtol=1e-5)
    assert jnp.allclose(sval, r_sval, atol=1e-5, rtol=1e-5)
    assert jnp.array_equal(greedy[:, 0], jnp.argmax(r_logp, axis=-1))

    print("KERNEL_OK")
</pallas_src>

<mosaic_0001>
module attributes {stable_mosaic.version = 11 : i64} {
  func.func @sac_kernel(%arg0: memref<1xf32, #tpu.memory_space<smem>>, %arg1: memref<8x17xf32, #tpu.memory_space<vmem>>, %arg2: memref<17x512xf32, #tpu.memory_space<vmem>>, %arg3: memref<512x12xf32, #tpu.memory_space<vmem>>, %arg4: memref<8x128xf32, #tpu.memory_space<vmem>>) attributes {dimension_semantics = [], scalar_prefetch = 0 : i64, scratch_operands = 0 : i64, tpu.core_type = #tpu.core_type<tc>} {
    %c0 = arith.constant 0 : index
    %c0_0 = arith.constant 0 : index
    %0 = vector.load %arg1[%c0, %c0_0] : memref<8x17xf32, #tpu.memory_space<vmem>>, vector<8x17xf32>
    %c0_1 = arith.constant 0 : index
    %c0_2 = arith.constant 0 : index
    %1 = vector.load %arg2[%c0_1, %c0_2] : memref<17x512xf32, #tpu.memory_space<vmem>>, vector<17x512xf32>
    %cst = arith.constant dense<0.000000e+00> : vector<8x512xf32>
    %2 = tpu.matmul %0, %1, %cst {dimension_numbers = #tpu.dot_dimension_numbers<[1], [0], [0], [1], [0, 0, 1, 1], [], []>} : vector<8x17xf32>, vector<17x512xf32>, vector<8x512xf32> -> vector<8x512xf32>
    %cst_3 = arith.constant 0.000000e+00 : f32
    %3 = vector.broadcast %cst_3 : f32 to vector<8x512xf32>
    %4 = arith.maximumf %2, %3 : vector<8x512xf32>
    %c0_4 = arith.constant 0 : index
    %c0_5 = arith.constant 0 : index
    %5 = vector.load %arg3[%c0_4, %c0_5] : memref<512x12xf32, #tpu.memory_space<vmem>>, vector<512x12xf32>
    %cst_6 = arith.constant dense<0.000000e+00> : vector<8x12xf32>
    %6 = tpu.matmul %4, %5, %cst_6 {dimension_numbers = #tpu.dot_dimension_numbers<[1], [0], [0], [1], [0, 0, 1, 1], [], []>} : vector<8x512xf32>, vector<512x12xf32>, vector<8x12xf32> -> vector<8x12xf32>
    %7 = vector.extract_strided_slice %6 {offsets = [0, 0], sizes = [8, 4], strides = [1, 1]} : vector<8x12xf32> to vector<8x4xf32>
    %8 = vector.extract_strided_slice %6 {offsets = [0, 4], sizes = [8, 4], strides = [1, 1]} : vector<8x12xf32> to vector<8x4xf32>
    %9 = vector.extract_strided_slice %6 {offsets = [0, 8], sizes = [8, 4], strides = [1, 1]} : vector<8x12xf32> to vector<8x4xf32>
    %cst_7 = arith.constant dense<0xFF800000> : vector<8xf32>
    %10 = vector.multi_reduction <maximumf>, %7, %cst_7 [1] : vector<8x4xf32> to vector<8xf32>
    %11 = vector.shape_cast %10 : vector<8xf32> to vector<8x1xf32>
    %12 = vector.broadcast %11 : vector<8x1xf32> to vector<8x4xf32>
    %13 = arith.subf %7, %12 : vector<8x4xf32>
    %14 = math.exp %13 : vector<8x4xf32>
    %cst_8 = arith.constant dense<0.000000e+00> : vector<8xf32>
    %15 = vector.multi_reduction <add>, %14, %cst_8 [1] : vector<8x4xf32> to vector<8xf32>
    %16 = vector.shape_cast %15 : vector<8xf32> to vector<8x1xf32>
    %17 = tpu.reciprocal %16 : vector<8x1xf32> -> vector<8x1xf32>
    %18 = vector.broadcast %17 : vector<8x1xf32> to vector<8x4xf32>
    %19 = arith.mulf %14, %18 : vector<8x4xf32>
    %cst_9 = arith.constant 9.99999993E-9 : f32
    %20 = vector.broadcast %cst_9 : f32 to vector<8x4xf32>
    %21 = arith.addf %19, %20 : vector<8x4xf32>
    %22 = math.log %21 : vector<8x4xf32>
    %23 = arith.minimumf %8, %9 : vector<8x4xf32>
    %c0_10 = arith.constant 0 : index
    %24 = memref.load %arg0[%c0_10] : memref<1xf32, #tpu.memory_space<smem>>
    %25 = vector.broadcast %24 : f32 to vector<8x4xf32>
    %26 = arith.mulf %25, %22 : vector<8x4xf32>
    %27 = arith.subf %23, %26 : vector<8x4xf32>
    %28 = arith.mulf %19, %27 : vector<8x4xf32>
    %cst_11 = arith.constant dense<0.000000e+00> : vector<8xf32>
    %29 = vector.multi_reduction <add>, %28, %cst_11 [1] : vector<8x4xf32> to vector<8xf32>
    %30 = vector.shape_cast %29 : vector<8xf32> to vector<8x1xf32>
    %cst_12 = arith.constant 0.000000e+00 : f32
    %31 = vector.broadcast %cst_12 : f32 to vector<8x128xf32>
    %c0_13 = arith.constant 0 : index
    %c0_14 = arith.constant 0 : index
    %32 = vector.load %arg4[%c0_13, %c0_14] : memref<8x128xf32, #tpu.memory_space<vmem>>, vector<8x128xf32>
    tpu.vector_store %arg4[%c0_13, %c0_14], %31 {strides = array<i32>} : memref<8x128xf32, #tpu.memory_space<vmem>>, vector<8x128xf32>,
    %c0_15 = arith.constant 0 : index
    %c0_16 = arith.constant 0 : index
    %33 = vector.load %arg4[%c0_15, %c0_16] : memref<8x128xf32, #tpu.memory_space<vmem>>, vector<8x4xf32>
    tpu.vector_store %arg4[%c0_15, %c0_16], %19 {strides = array<i32>} : memref<8x128xf32, #tpu.memory_space<vmem>>, vector<8x4xf32>,
    %c0_17 = arith.constant 0 : index
    %c4 = arith.constant 4 : index
    %34 = vector.load %arg4[%c0_17, %c4] : memref<8x128xf32, #tpu.memory_space<vmem>>, vector<8x4xf32>
    tpu.vector_store %arg4[%c0_17, %c4], %22 {strides = array<i32>} : memref<8x128xf32, #tpu.memory_space<vmem>>, vector<8x4xf32>,
    %c0_18 = arith.constant 0 : index
    %c8 = arith.constant 8 : index
    %35 = vector.load %arg4[%c0_18, %c8] : memref<8x128xf32, #tpu.memory_space<vmem>>, vector<8x1xf32>
    tpu.vector_store %arg4[%c0_18, %c8], %30 {strides = array<i32>} : memref<8x128xf32, #tpu.memory_space<vmem>>, vector<8x1xf32>,
    return
  }
}

</mosaic_0001>

<bundles_post_ra>
// kernel: sac_forward.1
= control target key start
LH: loop header
LB: loop body
LE: loop exit
PB: predicated region body
PF: predicated region fallthrough
CT: control target
= control target key end

     0   :  { %vm35_vm0 = vcmask 1040384   ;;  %v533_v3 = vmov 0.0   ;;  %vm31_vm1 = vcmask 138240   ;;  %vm398_vm2 = vcmask 31744   ;;  %s535_s9 = smov 4   ;;  %s815_s2 = inlined_call_operand.vmem [shape: f32[17,512], index: 2, kind: input, shape index: {}]   ;;  %s816_s4 = inlined_call_operand.vmem [shape: f32[8,128], index: 4, kind: output, shape index: {}]   ;;  %s817_s1 = inlined_call_operand.vmem [shape: f32[8,17], index: 1, kind: input, shape index: {}]   ;;  %s818_s3 = inlined_call_operand.vmem [shape: f32[512,12], index: 3, kind: input, shape index: {}]   ;;  %s819_s0 = inlined_call_operand.<no memory space> [shape: f32[1], index: 0, kind: input, shape index: {}]  }
   0x1   :  { %v28_v0 = vld [vmem:[%s815_s2 + $0x48] sm:$0x1]  ;;  %v30_v1 = vld [vmem:[%s815_s2 + $0x58] sm:$0x1]  ;;  %v27_v2 = vld [vmem:[%s815_s2 + $0x40] sm:$0x1]  ;;  %112 = vmatprep.mubr.f32.mxu0 %v533_v3  ;;  %434 = vst [vmem:[%s816_s4] sm:$0xff] %v533_v3  ;;  %183 = vmatprep.mubr.f32.mxu1 %v533_v3 }
   0x2   :  { %448 = vmatprep.subr.msk.mxu0 %vm35_vm0, %v28_v0  ;;  %451 = vmatprep.subr.msk.mxu1 %vm35_vm0, %v30_v1  ;;  %v29_v4 = vld [vmem:[%s815_s2 + $0x50] sm:$0x1]  ;;  %v24_v5 = vld [vmem:[%s815_s2 + $0x28] sm:$0xff]  ;;  %v26_v6 = vld [vmem:[%s815_s2 + $0x38] sm:$0xff]  ;;  %vm440_vm3 = vcmask 64544   ;;  %vm442_vm4 = vcmask 72768  }
   0x3   :  { %449 = vmatpush1.msk.msra.mxu0 %vm35_vm0, %v27_v2  ;;  %452 = vmatpush1.msk.msra.mxu1 %vm35_vm0, %v29_v4  ;;  %v23_v7 = vld [vmem:[%s815_s2 + $0x20] sm:$0xff]  ;;  %v25_v8 = vld [vmem:[%s815_s2 + $0x30] sm:$0xff]  ;;  %v20_v9 = vld [vmem:[%s815_s2 + $0x8] sm:$0xff] }
   0x4   :  { %76 = vmatprep.subr.mxu0 %v24_v5  ;;  %147 = vmatprep.subr.mxu1 %v26_v6  ;;  %v22_v10 = vld [vmem:[%s815_s2 + $0x18] sm:$0xff]  ;;  %v19_v11 = vld [vmem:[%s815_s2] sm:$0xff]  ;;  %v21_v12 = vld [vmem:[%s815_s2 + $0x10] sm:$0xff] }
   0x5   :  { %77 = vmatpush1.msra.mxu0 %v23_v7  ;;  %148 = vmatpush1.msra.mxu1 %v25_v8  ;;  %v18_v13 = vld [vmem:[%s817_s1] sm:$0xff]  ;;  %v225_v14 = vld [vmem:[%s818_s3 + $0xf8] sm:$0xff]  ;;  %v224_v18 = vld [vmem:[%s818_s3 + $0xf0] sm:$0xff] }
   0x6   :  { %78 = vmatprep.subr.mxu0 %v20_v9  ;;  %149 = vmatprep.subr.mxu1 %v22_v10  ;;  %v257_v15 = vld [vmem:[%s818_s3 + $0x1f8] sm:$0xff]  ;;  %v256_v19 = vld [vmem:[%s818_s3 + $0x1f0] sm:$0xff]  ;;  %v223_v22 = vld [vmem:[%s818_s3 + $0xe8] sm:$0xff] }
   0x7   :  { %79 = vmatpush1.msra.mxu0 %v19_v11  ;;  %150 = vmatpush1.msra.mxu1 %v21_v12  ;;  %v209_v16 = vld [vmem:[%s818_s3 + $0x78] sm:$0xff]  ;;  %v208_v20 = vld [vmem:[%s818_s3 + $0x70] sm:$0xff]  ;;  %v255_v23 = vld [vmem:[%s818_s3 + $0x1e8] sm:$0xff] }
   0x8   :  { %v241_v17 = vld [vmem:[%s818_s3 + $0x178] sm:$0xff]  ;;  %450 = vmatmul.mubr.msk.f32.vlgmr.msra.gmra.mxu0 %vm31_vm1, %v18_v13  ;;  %453 = vmatmul.mubr.msk.f32.vlgmr.msra.gmra.mxu1 %vm31_vm1, %v18_v13  ;;  %v240_v21 = vld [vmem:[%s818_s3 + $0x170] sm:$0xff]  ;;  %v207_v24 = vld [vmem:[%s818_s3 + $0x68] sm:$0xff] }
   0x9   :  { %454 = vmatprep.subr.mxu0 %v225_v14  ;;  %489 = vmatprep.subr.mxu1 %v257_v15  ;;  %v239_v25 = vld [vmem:[%s818_s3 + $0x168] sm:$0xff]  ;;  %v222_v26 = vld [vmem:[%s818_s3 + $0xe0] sm:$0xff]  ;;  %v221_v30 = vld [vmem:[%s818_s3 + $0xd8] sm:$0xff] }
   0xa   :  { %455 = vmatpush3.msra.mxu0 %v209_v16  ;;  %490 = vmatpush3.msra.mxu1 %v241_v17  ;;  %v254_v27 = vld [vmem:[%s818_s3 + $0x1e0] sm:$0xff]  ;;  %v253_v31 = vld [vmem:[%s818_s3 + $0x1d8] sm:$0xff]  ;;  %v220_v34 = vld [vmem:[%s818_s3 + $0xd0] sm:$0xff] }
   0xb   :  { %456 = vmatprep.subr.mxu0 %v224_v18  ;;  %491 = vmatprep.subr.mxu1 %v256_v19  ;;  %v206_v28 = vld [vmem:[%s818_s3 + $0x60] sm:$0xff]  ;;  %v205_v32 = vld [vmem:[%s818_s3 + $0x58] sm:$0xff]  ;;  %v252_v35 = vld [vmem:[%s818_s3 + $0x1d0] sm:$0xff] }
   0xc   :  { %457 = vmatpush3.msra.mxu0 %v208_v20  ;;  %492 = vmatpush3.msra.mxu1 %v240_v21  ;;  %v238_v29 = vld [vmem:[%s818_s3 + $0x160] sm:$0xff]  ;;  %v237_v33 = vld [vmem:[%s818_s3 + $0x158] sm:$0xff]  ;;  %v204_v36 = vld [vmem:[%s818_s3 + $0x50] sm:$0xff] }
   0xd   :  { %458 = vmatprep.subr.mxu0 %v223_v22  ;;  %493 = vmatprep.subr.mxu1 %v255_v23  ;;  %v236_v37 = vld [vmem:[%s818_s3 + $0x150] sm:$0xff]  ;;  %v219_v38 = vld [vmem:[%s818_s3 + $0xc8] sm:$0xff]  ;;  %v218_v42 = vld [vmem:[%s818_s3 + $0xc0] sm:$0xff] }
   0xe   :  { %459 = vmatpush3.msra.mxu0 %v207_v24  ;;  %494 = vmatpush3.msra.mxu1 %v239_v25  ;;  %v251_v39 = vld [vmem:[%s818_s3 + $0x1c8] sm:$0xff]  ;;  %v250_v43 = vld [vmem:[%s818_s3 + $0x1c0] sm:$0xff]  ;;  %v217_v46 = vld [vmem:[%s818_s3 + $0xb8] sm:$0xff] }
   0xf   :  { %460 = vmatprep.subr.mxu0 %v222_v26  ;;  %495 = vmatprep.subr.mxu1 %v254_v27  ;;  %v203_v40 = vld [vmem:[%s818_s3 + $0x48] sm:$0xff]  ;;  %v202_v44 = vld [vmem:[%s818_s3 + $0x40] sm:$0xff]  ;;  %v249_v47 = vld [vmem:[%s818_s3 + $0x1b8] sm:$0xff] }
  0x10   :  { %461 = vmatpush3.msra.mxu0 %v206_v28  ;;  %496 = vmatpush3.msra.mxu1 %v238_v29  ;;  %v235_v41 = vld [vmem:[%s818_s3 + $0x148] sm:$0xff]  ;;  %v234_v45 = vld [vmem:[%s818_s3 + $0x140] sm:$0xff]  ;;  %v201_v48 = vld [vmem:[%s818_s3 + $0x38] sm:$0xff] }
  0x11   :  { %462 = vmatprep.subr.mxu0 %v221_v30  ;;  %497 = vmatprep.subr.mxu1 %v253_v31  ;;  %v233_v49 = vld [vmem:[%s818_s3 + $0x138] sm:$0xff]  ;;  %v216_v50 = vld [vmem:[%s818_s3 + $0xb0] sm:$0xff]  ;;  %v215_v54 = vld [vmem:[%s818_s3 + $0xa8] sm:$0xff] }
  0x12   :  { %463 = vmatpush3.msra.mxu0 %v205_v32  ;;  %498 = vmatpush3.msra.mxu1 %v237_v33  ;;  %v248_v51 = vld [vmem:[%s818_s3 + $0x1b0] sm:$0xff]  ;;  %v247_v55 = vld [vmem:[%s818_s3 + $0x1a8] sm:$0xff]  ;;  %v214_v58 = vld [vmem:[%s818_s3 + $0xa0] sm:$0xff] }
  0x13   :  { %464 = vmatprep.subr.mxu0 %v220_v34  ;;  %499 = vmatprep.subr.mxu1 %v252_v35  ;;  %v200_v52 = vld [vmem:[%s818_s3 + $0x30] sm:$0xff]  ;;  %v199_v56 = vld [vmem:[%s818_s3 + $0x28] sm:$0xff]  ;;  %v246_v59 = vld [vmem:[%s818_s3 + $0x1a0] sm:$0xff] }
  0x14   :  { %465 = vmatpush3.msra.mxu0 %v204_v36  ;;  %500 = vmatpush3.msra.mxu1 %v236_v37  ;;  %v232_v53 = vld [vmem:[%s818_s3 + $0x130] sm:$0xff]  ;;  %v231_v57 = vld [vmem:[%s818_s3 + $0x128] sm:$0xff]  ;;  %v198_v60 = vld [vmem:[%s818_s3 + $0x20] sm:$0xff] }
  0x15   :  { %466 = vmatprep.subr.mxu0 %v219_v38  ;;  %501 = vmatprep.subr.mxu1 %v251_v39  ;;  %v230_v61 = vld [vmem:[%s818_s3 + $0x120] sm:$0xff]  ;;  %v213_v62 = vld [vmem:[%s818_s3 + $0x98] sm:$0xff]  ;;  %v212_v2 = vld [vmem:[%s818_s3 + $0x90] sm:$0xff] }
  0x16   :  { %467 = vmatpush3.msra.mxu0 %v203_v40  ;;  %502 = vmatpush3.msra.mxu1 %v235_v41  ;;  %v245_v63 = vld [vmem:[%s818_s3 + $0x198] sm:$0xff]  ;;  %v244_v3 = vld [vmem:[%s818_s3 + $0x190] sm:$0xff]  ;;  %v211_v6 = vld [vmem:[%s818_s3 + $0x88] sm:$0xff]  ;;  %v419_v40 = vstv %s819_s0 }
  0x17   :  { %468 = vmatprep.subr.mxu0 %v218_v42  ;;  %503 = vmatprep.subr.mxu1 %v250_v43  ;;  %v197_v0 = vld [vmem:[%s818_s3 + $0x18] sm:$0xff]  ;;  %v196_v4 = vld [vmem:[%s818_s3 + $0x10] sm:$0xff]  ;;  %v243_v7 = vld [vmem:[%s818_s3 + $0x188] sm:$0xff] }
  0x18   :  { %469 = vmatpush3.msra.mxu0 %v202_v44  ;;  %504 = vmatpush3.msra.mxu1 %v234_v45  ;;  %v229_v1 = vld [vmem:[%s818_s3 + $0x118] sm:$0xff]  ;;  %v228_v5 = vld [vmem:[%s818_s3 + $0x110] sm:$0xff]  ;;  %v195_v8 = vld [vmem:[%s818_s3 + $0x8] sm:$0xff] }
  0x19   :  { %470 = vmatprep.subr.mxu0 %v217_v46  ;;  %505 = vmatprep.subr.mxu1 %v249_v47  ;;  %v227_v9 = vld [vmem:[%s818_s3 + $0x108] sm:$0xff]  ;;  %v210_v10 = vld [vmem:[%s818_s3 + $0x80] sm:$0xff] }
  0x1a   :  { %471 = vmatpush3.msra.mxu0 %v201_v48  ;;  %506 = vmatpush3.msra.mxu1 %v233_v49  ;;  %v242_v11 = vld [vmem:[%s818_s3 + $0x180] sm:$0xff] }
  0x1b   :  { %472 = vmatprep.subr.mxu0 %v216_v50  ;;  %507 = vmatprep.subr.mxu1 %v248_v51  ;;  %v194_v12 = vld [vmem:[%s818_s3] sm:$0xff] }
  0x1c   :  { %473 = vmatpush3.msra.mxu0 %v200_v52  ;;  %508 = vmatpush3.msra.mxu1 %v232_v53  ;;  %v226_v13 = vld [vmem:[%s818_s3 + $0x100] sm:$0xff]  ;;  %s534_s3 = smov 124  }
  0x1d   :  { %474 = vmatprep.subr.mxu0 %v215_v54  ;;  %509 = vmatprep.subr.mxu1 %v247_v55 }
  0x1e   :  { %475 = vmatpush3.msra.mxu0 %v199_v56  ;;  %510 = vmatpush3.msra.mxu1 %v231_v57 }
  0x1f   :  { %476 = vmatprep.subr.mxu0 %v214_v58  ;;  %511 = vmatprep.subr.mxu1 %v246_v59 }
  0x20   :  { %477 = vmatpush3.msra.mxu0 %v198_v60  ;;  %512 = vmatpush3.msra.mxu1 %v230_v61 }
  0x21   :  { %478 = vmatprep.subr.mxu0 %v213_v62  ;;  %513 = vmatprep.subr.mxu1 %v245_v63 }
  0x22   :  { %479 = vmatpush3.msra.mxu0 %v197_v0  ;;  %514 = vmatpush3.msra.mxu1 %v229_v1 }
  0x23   :  { %480 = vmatprep.subr.mxu0 %v212_v2  ;;  %515 = vmatprep.subr.mxu1 %v244_v3 }
  0x24   :  { %481 = vmatpush3.msra.mxu0 %v196_v4  ;;  %516 = vmatpush3.msra.mxu1 %v228_v5 }
  0x25   :  { %482 = vmatprep.subr.mxu0 %v211_v6  ;;  %517 = vmatprep.subr.mxu1 %v243_v7 }
  0x26   :  { %483 = vmatpush3.msra.mxu0 %v195_v8  ;;  %518 = vmatpush3.msra.mxu1 %v227_v9 }
  0x27   :  { %484 = vmatprep.subr.mxu0 %v210_v10  ;;  %519 = vmatprep.subr.mxu1 %v242_v11 }
  0x28   :  { %485 = vmatpush3.msra.mxu0 %v194_v12  ;;  %520 = vmatpush3.msra.mxu1 %v226_v13 }
  0xc8   :  { %v114_v14 = vpop.f32.mrf.mxu0  ;;  %v185_v15 = vpop.f32.mrf.mxu1 }
  0xc9   :  { %v190_v20 = vmax.f32 %v114_v14, 0.0  ;;  %v192_v21 = vmax.f32 %v185_v15, 0.0 }
  0xca   :  { %v116_v16 = vpop.f32.mrf.mxu0  ;;  %v187_v17 = vpop.f32.mrf.mxu1 }
  0xcb   :  { %v191_v18 = vmax.f32 %v116_v16, 0.0  ;;  %v193_v19 = vmax.f32 %v187_v17, 0.0 }
  0xcd   :  { %322 = vmatprep.mubr.f32.mxu0 %v191_v18  ;;  %392 = vmatprep.mubr.f32.mxu1 %v193_v19 }
  0xce   :  { %323 = vmatmul.mubr.f32.vlgmr.msra.gmra.mxu0 %v190_v20  ;;  %393 = vmatmul.mubr.f32.vlgmr.msra.gmra.mxu1 %v192_v21 }
 0x18e   :  { %v486_v22 = vpop.f32.mrf.mxu0  ;;  %v521_v23 = vpop.f32.mrf.mxu1 }
 0x190   :  { %v487_v24 = vpop.f32.mrf.mxu0  ;;  %v522_v25 = vpop.f32.mrf.mxu1 }
 0x191   :  { %v488_v26 = vadd.f32 %v487_v24, %v486_v22  ;;  %v523_v27 = vadd.f32 %v522_v25, %v521_v23 }
 0x193   :  { %v395_v28 = vadd.f32 %v523_v27, %v488_v26 }
 0x195   :  { %414 = vrot.lane.b32.xlu1 %v395_v28, %s534_s3  ;;  %v399_v29 = vsel %vm398_vm2, %v395_v28, -inf }
 0x196   :  { %400 = vmax.xlane.f32.xlu0 %v399_v29 }
 0x207   :  { %v415_v43 = vpop.permute.xlu1 %414 }
 0x208   :  { %v417_v44 = vmin.f32 %v395_v28, %v415_v43 }
 0x21f   :  { %v401_v30 = vpop.xlane.xlu0 %400 }
 0x220   :  { %v402_v31 = vsub.f32 %v395_v28, %v401_v30 }
 0x222   :  { %v403_v32 = vmul.f32 1.442695, %v402_v31 }
 0x224   :  { %527 = vpow2.f32 %v403_v32 }
 0x231   :  { %v528_v33 = vpop.eup %527 }
 0x232   :  { %v405_v34 = vsel %vm398_vm2, %v528_v33, 0.0 }
 0x233   :  { %406 = vadd.xlane.f32.xlu0 %v405_v34 }
 0x2bc   :  { %v407_v35 = vpop.xlane.xlu0 %406 }
 0x2bd   :  { %529 = vrcp.f32 %v407_v35 }
 0x2ca   :  { %v530_v36 = vpop.eup %529 }
 0x2cb   :  { %v409_v37 = vmul.f32 %v530_v36, %v528_v33 }
 0x2cd   :  { %v410_v38 = vadd.f32 1e-08, %v409_v37  ;;  %435 = vst.msk [vmem:[%s816_s4] sm:$0xff] %vm398_vm2, %v409_v37 }
 0x2cf   :  { %531 = vlog2.f32 %v410_v38 }
 0x2dc   :  { %v532_v39 = vpop.eup %531 }
 0x2dd   :  { %v412_v41 = vmul.f32 0.6931472, %v532_v39 }
 0x2df   :  { %v420_v42 = vmul.f32 %v419_v40, %v412_v41 }
 0x2e1   :  { %422 = vrot.lane.b32.xlu1 %v420_v42, %s535_s9 }
 0x353   :  { %v423_v45 = vpop.permute.xlu1 %422 }
 0x354   :  { %v425_v46 = vsub.f32 %v417_v44, %v423_v45 }
 0x356   :  { %427 = vrot.lane.b32.xlu0 %v425_v46, %s534_s3 }
 0x35a   :  { %437 = vrot.lane.b32.xlu0 %v412_v41, %s535_s9 }
 0x3c8   :  { %v428_v47 = vpop.permute.xlu0 %427 }
 0x3c9   :  { %v430_v48 = vmul.f32 %v428_v47, %v409_v37 }
 0x3cb   :  { %v431_v49 = vsel %vm398_vm2, %v430_v48, 0.0 }
 0x3cc   :  { %432 = vadd.xlane.f32.xlu1 %v431_v49  ;;  %v438_v50 = vpop.permute.xlu0 %437 }
 0x3cd   :  { %441 = vst.msk [vmem:[%s816_s4] sm:$0xff] %vm440_vm3, %v438_v50 }
 0x455   :  { %v433_v51 = vpop.xlane.xlu1 %432 }
 0x456   :  { %443 = vst.msk [vmem:[%s816_s4] sm:$0xff] %vm442_vm4, %v433_v51 }

</bundles_post_ra>
